<compile_context>
chip_gen: v7x
topology: tpu7x:2x2x1
jax: 0.10.0
libtpu: 0.0.40
codegen_flags: <defaults>
</compile_context>

<pallas_src>
import functools

import jax
import jax.numpy as jnp
from jax.experimental import pallas as pl
from jax.experimental.pallas import tpu as pltpu


def _round_up(x, m):
    return (x + m - 1) // m * m


def _label_smoothing_kernel(pred_ref, target_ref, out_ref, acc_ref, *,
                            classes, smoothing, n_total, tile_n):
    confidence = 1.0 - smoothing
    smooth_val = smoothing / (classes - 1) if classes > 1 else 0.0

    i = pl.program_id(0)

    @pl.when(i == 0)
    def _init():
        acc_ref[...] = jnp.zeros_like(acc_ref)

    pred = pred_ref[...].astype(jnp.float32)   # (tile_n, C), per-tile cast (free)
    tgt = target_ref[...]                       # (tile_n, 1) int32

    # Numerically-stable log-softmax pieces; no full (tile_n, C) logp / true_dist.
    m = jnp.max(pred, axis=-1, keepdims=True)                         # (tile_n, 1)
    shifted = pred - m                                                # (tile_n, C)
    lse = jnp.log(jnp.sum(jnp.exp(shifted), axis=-1, keepdims=True))  # (tile_n, 1)

    row_sum = jnp.sum(shifted, axis=-1, keepdims=True)                # (tile_n, 1)
    col = jax.lax.broadcasted_iota(jnp.int32, shifted.shape, 1)
    shifted_at_tgt = jnp.sum(jnp.where(col == tgt, shifted, 0.0),
                             axis=-1, keepdims=True)                  # (tile_n, 1)

    sum_logp = row_sum - jnp.float32(classes) * lse                   # sum_c logp
    logp_tgt = shifted_at_tgt - lse                                   # logp[target]

    per_row = -(jnp.float32(smooth_val) * sum_logp
                + jnp.float32(confidence - smooth_val) * logp_tgt)    # (tile_n, 1)

    # Mask padding rows of a ragged last tile out of the sum (mean uses global N).
    row = jax.lax.broadcasted_iota(jnp.int32, per_row.shape, 0) + i * tile_n
    per_row = jnp.where(row < n_total, per_row, 0.0)

    acc_ref[...] += jnp.sum(per_row, axis=0, keepdims=True)           # (1, 1)

    @pl.when(i == pl.num_programs(0) - 1)
    def _finish():
        out_ref[...] = acc_ref[...] / jnp.float32(n_total)


def label_smoothing_loss(pred, target, *, classes, smoothing=0.0):
    """pred: (N, C) float (any dtype), target: (N,) int. Returns scalar f32 loss."""
    n, c = pred.shape
    assert c == classes

    # Pick TILE_N (multiple of 8) so 2 x (tile_n x C x 4B) stays well under the
    # default scoped VMEM limit on all TPU generations (incl. v7x's 64 MiB phys).
    bytes_per_row = c * 4                      # f32 temporaries dominate in-kernel
    budget = 8 * 1024 * 1024                   # per pipeline buffer
    tile_n = max(8, min(512, budget // max(bytes_per_row, 1)))
    tile_n = max(8, (tile_n // 8) * 8)
    tile_n = min(tile_n, _round_up(n, 8))
    # TODO(synk): for very large C where even tile_n=8 overflows VMEM, add a
    # second ("arbitrary") grid axis over class tiles with an online max/LSE.

    n_pad = _round_up(n, tile_n)
    if n_pad != n:
        pred = jnp.pad(pred, ((0, n_pad - n), (0, 0)))
        target = jnp.pad(target, (0, n_pad - n))
    target_2d = target.astype(jnp.int32).reshape(n_pad, 1)
    num_blocks = n_pad // tile_n

    kernel = functools.partial(_label_smoothing_kernel, classes=classes,
                               smoothing=smoothing, n_total=n, tile_n=tile_n)

    cost = pl.CostEstimate(
        flops=6 * n * c,
        transcendentals=n * c + n,
        bytes_accessed=n * c * pred.dtype.itemsize + n * 4 + 4,
    )

    out = pl.pallas_call(
        kernel,
        out_shape=jax.ShapeDtypeStruct((1, 1), jnp.float32),
        grid=(num_blocks,),
        in_specs=[
            pl.BlockSpec((tile_n, c), lambda i: (i, 0)),   # pred, native dtype
            pl.BlockSpec((tile_n, 1), lambda i: (i, 0)),   # target indices
        ],
        out_specs=pl.BlockSpec((1, 1), lambda i: (0, 0)),  # resident accumulator out
        scratch_shapes=[pltpu.VMEM((1, 1), jnp.float32)],
        compiler_params=pltpu.CompilerParams(
            dimension_semantics=("arbitrary",)),           # carries the running sum
        cost_estimate=cost,
    )(pred, target_2d)
    return out[0, 0]


def _reference(pred, target, *, classes, smoothing):
    # Pure-JAX reference mirroring the PyTorch module.
    confidence = 1.0 - smoothing
    logp = jax.nn.log_softmax(pred.astype(jnp.float32), axis=-1)
    true_dist = jnp.full_like(logp, smoothing / (classes - 1))
    true_dist = true_dist.at[jnp.arange(pred.shape[0]), target].set(confidence)
    return jnp.mean(jnp.sum(-true_dist * logp, axis=-1))


if __name__ == "__main__":
    key = jax.random.PRNGKey(0)
    k_pred, k_tgt = jax.random.split(key)

    batch, classes = 8, 32
    smoothing = 0.1

    pred = jax.random.normal(k_pred, (batch, classes), dtype=jnp.float32)
    target = jax.random.randint(k_tgt, (batch,), 0, classes, dtype=jnp.int32)

    loss = label_smoothing_loss(pred, target, classes=classes,
                                smoothing=smoothing)
    loss = jax.block_until_ready(loss)

    ref = _reference(pred, target, classes=classes, smoothing=smoothing)
    assert jnp.allclose(loss, ref, atol=1e-5, rtol=1e-5), (loss, ref)

    print("KERNEL_OK")
</pallas_src>

<mosaic_0001>
module attributes {stable_mosaic.version = 11 : i64} {
  func.func @_label_smoothing_kernel(%arg0: i32, %arg1: memref<8x32xf32, #tpu.memory_space<vmem>>, %arg2: memref<8x1xi32, #tpu.memory_space<vmem>>, %arg3: memref<1x1xf32, #tpu.memory_space<vmem>>, %arg4: memref<1x1xf32, #tpu.memory_space<vmem>>) attributes {dimension_semantics = [#tpu.dimension_semantics<arbitrary>], iteration_bounds = array<i64: 1>, scalar_prefetch = 0 : i64, scratch_operands = 1 : i64, tpu.core_type = #tpu.core_type<tc>, window_params = [{transform_indices = @transform_0, window_bounds = array<i64: 8, 32>}, {transform_indices = @transform_1, window_bounds = array<i64: 8, 1>}, {pipeline_mode = #tpu.pipeline_mode<synchronous>, transform_indices = @transform_2, window_bounds = array<i64: 1, 1>}]} {
    %c0_i32 = arith.constant 0 : i32
    %0 = arith.cmpi eq, %arg0, %c0_i32 : i32
    %1 = arith.extui %0 : i1 to i32
    %c0_i32_0 = arith.constant 0 : i32
    %2 = arith.cmpi ne, %1, %c0_i32_0 : i32
    scf.if %2 {
      %cst_21 = arith.constant 0.000000e+00 : f32
      %49 = vector.broadcast %cst_21 : f32 to vector<1x1xf32>
      %c0_22 = arith.constant 0 : index
      %c0_23 = arith.constant 0 : index
      %50 = vector.load %arg4[%c0_22, %c0_23] : memref<1x1xf32, #tpu.memory_space<vmem>>, vector<1x1xf32>
      tpu.vector_store %arg4[%c0_22, %c0_23], %49 {strides = array<i32>} : memref<1x1xf32, #tpu.memory_space<vmem>>, vector<1x1xf32>,
    } else {
    }
    %c0 = arith.constant 0 : index
    %c0_1 = arith.constant 0 : index
    %3 = vector.load %arg1[%c0, %c0_1] : memref<8x32xf32, #tpu.memory_space<vmem>>, vector<8x32xf32>
    %c0_2 = arith.constant 0 : index
    %c0_3 = arith.constant 0 : index
    %4 = vector.load %arg2[%c0_2, %c0_3] : memref<8x1xi32, #tpu.memory_space<vmem>>, vector<8x1xi32>
    %cst = arith.constant dense<0xFF800000> : vector<8xf32>
    %5 = vector.multi_reduction <maximumf>, %3, %cst [1] : vector<8x32xf32> to vector<8xf32>
    %6 = vector.shape_cast %5 : vector<8xf32> to vector<8x1xf32>
    %7 = vector.broadcast %6 : vector<8x1xf32> to vector<8x32xf32>
    %8 = arith.subf %3, %7 : vector<8x32xf32>
    %9 = math.exp %8 : vector<8x32xf32>
    %cst_4 = arith.constant dense<0.000000e+00> : vector<8xf32>
    %10 = vector.multi_reduction <add>, %9, %cst_4 [1] : vector<8x32xf32> to vector<8xf32>
    %11 = vector.shape_cast %10 : vector<8xf32> to vector<8x1xf32>
    %12 = math.log %11 : vector<8x1xf32>
    %cst_5 = arith.constant dense<0.000000e+00> : vector<8xf32>
    %13 = vector.multi_reduction <add>, %8, %cst_5 [1] : vector<8x32xf32> to vector<8xf32>
    %14 = vector.shape_cast %13 : vector<8xf32> to vector<8x1xf32>
    %15 = tpu.iota {dimensions = array<i32: 1>} : vector<8x32xi32>
    %16 = vector.broadcast %4 : vector<8x1xi32> to vector<8x32xi32>
    %17 = arith.cmpi eq, %15, %16 : vector<8x32xi32>
    %cst_6 = arith.constant 0.000000e+00 : f32
    %18 = vector.broadcast %cst_6 : f32 to vector<8x32xf32>
    %19 = arith.select %17, %8, %18 : vector<8x32xi1>, vector<8x32xf32>
    %cst_7 = arith.constant dense<0.000000e+00> : vector<8xf32>
    %20 = vector.multi_reduction <add>, %19, %cst_7 [1] : vector<8x32xf32> to vector<8xf32>
    %21 = vector.shape_cast %20 : vector<8xf32> to vector<8x1xf32>
    %cst_8 = arith.constant 3.200000e+01 : f32
    %22 = vector.broadcast %cst_8 : f32 to vector<8x1xf32>
    %23 = arith.mulf %22, %12 : vector<8x1xf32>
    %24 = arith.subf %14, %23 : vector<8x1xf32>
    %25 = arith.subf %21, %12 : vector<8x1xf32>
    %cst_9 = arith.constant 0.0032258064 : f32
    %26 = vector.broadcast %cst_9 : f32 to vector<8x1xf32>
    %27 = arith.mulf %26, %24 : vector<8x1xf32>
    %cst_10 = arith.constant 0.896774172 : f32
    %28 = vector.broadcast %cst_10 : f32 to vector<8x1xf32>
    %29 = arith.mulf %28, %25 : vector<8x1xf32>
    %30 = arith.addf %27, %29 : vector<8x1xf32>
    %cst_11 = arith.constant 0.000000e+00 : f32
    %31 = vector.broadcast %cst_11 : f32 to vector<8x1xf32>
    %32 = arith.subf %31, %30 : vector<8x1xf32>
    %33 = tpu.iota {dimensions = array<i32: 0>} : vector<8x1xi32>
    %c8_i32 = arith.constant 8 : i32
    %34 = arith.muli %arg0, %c8_i32 : i32
    %35 = vector.broadcast %34 : i32 to vector<8x1xi32>
    %36 = arith.addi %33, %35 : vector<8x1xi32>
    %c8_i32_12 = arith.constant 8 : i32
    %37 = vector.broadcast %c8_i32_12 : i32 to vector<8x1xi32>
    %38 = arith.cmpi slt, %36, %37 : vector<8x1xi32>
    %cst_13 = arith.constant 0.000000e+00 : f32
    %39 = vector.broadcast %cst_13 : f32 to vector<8x1xf32>
    %40 = arith.select %38, %32, %39 : vector<8x1xi1>, vector<8x1xf32>
    %c0_14 = arith.constant 0 : index
    %c0_15 = arith.constant 0 : index
    %41 = vector.load %arg4[%c0_14, %c0_15] : memref<1x1xf32, #tpu.memory_space<vmem>>, vector<1x1xf32>
    %cst_16 = arith.constant dense<0.000000e+00> : vector<1xf32>
    %42 = vector.multi_reduction <add>, %40, %cst_16 [0] : vector<8x1xf32> to vector<1xf32>
    %43 = vector.shape_cast %42 : vector<1xf32> to vector<1x1xf32>
    %44 = arith.addf %41, %43 : vector<1x1xf32>
    %c0_17 = arith.constant 0 : index
    %c0_18 = arith.constant 0 : index
    %45 = vector.load %arg4[%c0_17, %c0_18] : memref<1x1xf32, #tpu.memory_space<vmem>>, vector<1x1xf32>
    tpu.vector_store %arg4[%c0_17, %c0_18], %44 {strides = array<i32>} : memref<1x1xf32, #tpu.memory_space<vmem>>, vector<1x1xf32>,
    %c0_i32_19 = arith.constant 0 : i32
    %46 = arith.cmpi eq, %arg0, %c0_i32_19 : i32
    %47 = arith.extui %46 : i1 to i32
    %c0_i32_20 = arith.constant 0 : i32
    %48 = arith.cmpi ne, %47, %c0_i32_20 : i32
    scf.if %48 {
      %c0_21 = arith.constant 0 : index
      %c0_22 = arith.constant 0 : index
      %49 = vector.load %arg4[%c0_21, %c0_22] : memref<1x1xf32, #tpu.memory_space<vmem>>, vector<1x1xf32>
      %cst_23 = arith.constant 8.000000e+00 : f32
      %50 = vector.broadcast %cst_23 : f32 to vector<1x1xf32>
      %51 = arith.divf %49, %50 : vector<1x1xf32>
      %c0_24 = arith.constant 0 : index
      %c0_25 = arith.constant 0 : index
      %52 = vector.load %arg3[%c0_24, %c0_25] : memref<1x1xf32, #tpu.memory_space<vmem>>, vector<1x1xf32>
      tpu.vector_store %arg3[%c0_24, %c0_25], %51 {strides = array<i32>} : memref<1x1xf32, #tpu.memory_space<vmem>>, vector<1x1xf32>,
    } else {
    }
    return
  }
  func.func @transform_0(%arg0: i32) -> (i32, i32) {
    %c0_i32 = arith.constant 0 : i32
    %c0_i32_0 = arith.constant 0 : i32
    return %arg0, %c0_i32 : i32, i32
  }
  func.func @transform_1(%arg0: i32) -> (i32, i32) {
    %c0_i32 = arith.constant 0 : i32
    %c0_i32_0 = arith.constant 0 : i32
    return %arg0, %c0_i32 : i32, i32
  }
  func.func @transform_2(%arg0: i32) -> (i32, i32) {
    %c0_i32 = arith.constant 0 : i32
    %c0_i32_0 = arith.constant 0 : i32
    %c0_i32_1 = arith.constant 0 : i32
    return %c0_i32, %c0_i32_0 : i32, i32
  }
}

</mosaic_0001>

<bundles_post_ra>
// kernel: tpu_custom_call.1
= control target key start
LH: loop header
LB: loop body
LE: loop exit
PB: predicated region body
PF: predicated region fallthrough
CT: control target
= control target key end

     0   :  { %vm20_vm0 = vcmask 261120   ;;  %s165_s0 = inlined_call_operand.vmem [shape: f32[8,32], index: 0, kind: input, shape index: {}]   ;;  %s166_s1 = inlined_call_operand.vmem [shape: s32[8,1], index: 1, kind: input, shape index: {}]   ;;  %s167_s2 = inlined_call_operand.hbm [shape: f32[1,1], index: 2, kind: output, shape index: {}]  }
   0x1   :  { %v18_v0 = vld [vmem:[%s165_s0] sm:$0xff] }
   0x2   :  { %7 = vsyncpa [#allocation4], 0  ;;  %v21_v1 = vsel %vm20_vm0, %v18_v0, -inf  ;;  %v122_v2 = vmov 0   ;;  %v19_v3 = vld [vmem:[%s166_s1] sm:$0xff]  ;;  %v35_v7 = vlaneseq  ;;  %vm16_vm2 = vcmask 0  }
   0x3   :  { %93 = vset.pattern.permute.xlu0 %v122_v2  ;;  %v123_v15 = vmov 0.0   ;;  %s124_s0 = smov [#allocation3]  }
   0x4   :  { %22 = vmax.xlane.f32.xlu0 %v21_v1  ;;  %v36_v8 = vand.u32 127, %v35_v7  ;;  %17 = vst.msk [vmem:[#allocation2] sm:$0x1] %vm16_vm2, %v123_v15  ;;  %s82_s1 = sshll.u32 %s124_s0, 4  ;;  %s83_s1 = int_to_ptr.vmem [resolvable:$true] %s82_s1 }
   0x5   :  { %s98_s13 = scalar_lea.vmem %s83_s1, 16  ;;  %s102_s14 = scalar_lea.vmem %s83_s1, 32 }
   0x6   :  { %p99_p0 = scmp.ne.s32.totalorder %s83_s1, %s98_s13  ;;  %p103_p1 = scmp.lt.s32.totalorder %s83_s1, %s83_s1 }
   0x7   :  { %p104_p2 = scmp.lt.s32.totalorder %s102_s14, %s98_s13 }
   0x9   :  { %p105_p3 = por %p104_p2, %p103_p1 }
   0xb   :  { %v59_v33 = vld [vmem:[#allocation2] sm:$0x1]  ;;  %p106_p4 = pnand %p105_p3, %p99_p0 }
  0x1a   :  { %38 = vperm.xlu0 %93, %v19_v3  }
  0x91   :  { %v23_v4 = vpop.xlane.xlu0 %22 }
  0x92   :  { %v24_v5 = vsub.f32 %v18_v0, %v23_v4 }
  0x94   :  { %v25_v6 = vmul.f32 1.442695, %v24_v5  ;;  %v32_v12 = vsel %vm20_vm0, %v24_v5, 0.0 }
  0x96   :  { %94 = vpow2.f32 %v25_v6 }
  0x99   :  { %v39_v10 = vpop.permute.xlu0 %38 }
  0x9a   :  { %vm40_vm1 = vcmp.eq.s32.totalorder %v36_v8, %v39_v10 }
  0x9b   :  { %v41_v13 = vsel %vm40_vm1, %v24_v5, 0.0 }
  0x9c   :  { %v42_v14 = vsel %vm20_vm0, %v41_v13, 0.0 }
  0xa0   :  { %v95_v9 = vpop.eup %94 }
  0xa1   :  { %v27_v11 = vsel %vm20_vm0, %v95_v9, 0.0 }
  0xa2   :  { %28 = vadd.xlane.f32.xlu1 %v27_v11 }
  0xa6   :  { %33 = vadd.xlane.f32.xlu1 %v32_v12 }
  0xaa   :  { %43 = vadd.xlane.f32.xlu1 %v42_v14 }
 0x12f   :  { %v29_v16 = vpop.xlane.xlu1 %28 }
 0x130   :  { %96 = vlog2.f32 %v29_v16 }
 0x133   :  { %v34_v17 = vpop.xlane.xlu1 %33 }
 0x137   :  { %v44_v20 = vpop.xlane.xlu1 %43 }
 0x13a   :  { %v97_v18 = vpop.eup %96 }
 0x13b   :  { %v31_v19 = vmul.f32 0.6931472, %v97_v18 }
 0x13d   :  { %v45_v21 = vmul.f32 32.0, %v31_v19  ;;  %v47_v22 = vsub.f32 %v44_v20, %v31_v19 }
 0x13f   :  { %v46_v23 = vsub.f32 %v34_v17, %v45_v21  ;;  %v49_v25 = vmul.f32 0.8967742, %v47_v22 }
 0x141   :  { %v48_v24 = vmul.f32 0.0032258064, %v46_v23 }
 0x143   :  { %v50_v26 = vadd.f32 %v49_v25, %v48_v24 }
 0x145   :  { %v51_v27 = vsub.f32 0.0, %v50_v26 }
 0x147   :  { %v60_v28 = vrot.slane %v51_v27, 4 }
 0x149   :  { %v61_v29 = vadd.f32 %v60_v28, %v51_v27 }
 0x14b   :  { %v62_v30 = vrot.slane %v61_v29, 2 }
 0x14d   :  { %v63_v31 = vadd.f32 %v62_v30, %v61_v29 }
 0x14f   :  { %v64_v32 = vrot.slane %v63_v31, 1 }
 0x151   :  { %v65_v34 = vadd.f32 %v64_v32, %v63_v31 }
 0x153   :  { %v66_v35 = vadd.f32 %v65_v34, %v59_v33 }
 0x155   :  { %68 = vst.msk [vmem:[#allocation2] sm:$0x1] %vm16_vm2, %v66_v35 }
 0x15c   :  { %v72_v36 = vld [vmem:[#allocation2] sm:$0x1] }
 0x15d   :  { %v74_v37 = vmul.f32 0.125, %v72_v36 }
 0x15f   :  { %75 = vst.msk [vmem:[#allocation3] sm:$0x1] %vm16_vm2, %v74_v37 }
 0x160   :  { %109 = shalt.err (!%p106_p4)
}
 0x161   :  { %s110_s17 = scalar_lea.hbm %s167_s2, 16 }
 0x162   :  { %p111_p5 = scmp.ne.s32.totalorder %s167_s2, %s110_s17  ;;  %p114_p6 = scmp.lt.u32.totalorder %s110_s17, %s167_s2 }
 0x164   :  { %p116_p7 = pnand %p114_p6, %p111_p5 }
 0x166   :  { %119 = shalt.err (!%p116_p7)
}
 0x167   :  { %85 = dma.vmem_to_hbm [thread:$0]  %s83_s1, 16, %s167_s2, [#allocation4]  }
 0x168   :  { %120 = dma.done.wait [#allocation4], 16  }
 0x169   :  { %121 = vsyncadd [#allocation4], 4294967280 }
 0x16a   :  { %89 = vsyncpa [#allocation4], 1 }

</bundles_post_ra>
